<compile_context>
chip_gen: v5e
topology: v5e:2x2
jax: 0.10.0
libtpu: 0.0.40
codegen_flags: <defaults>
</compile_context>

<pallas_src>
import jax
import jax.numpy as jnp
from jax.experimental import pallas as pl
from jax.experimental.pallas import tpu as pltpu


def _attention_kernel(x_ref, w1_ref, b1_ref, w2_ref, o_ref):
    # x_ref:  (TB, L, C) batch tile, NLC layout
    # w1_ref: (C, C)     conv1 weight stored as (in, out)
    # b1_ref: (1, C)     conv1 bias
    # w2_ref: (1, C)     conv2 weight as a row (single output channel)
    # o_ref:  (TB, C)    pooled output for this batch tile
    tb, L, C = x_ref.shape

    x3 = x_ref[...]                                  # (TB, L, C), input dtype
    x2 = x3.reshape(tb * L, C)                       # layout no-op (L % 8 == 0)

    # conv1 (1x1) + tanh: one MXU matmul with M = TB*L, f32 accumulation.
    h = jnp.tanh(
        jnp.dot(x2, w1_ref[...], preferred_element_type=jnp.float32)
        + b1_ref[...]
    )                                                # (TB*L, C) f32

    # conv2 (1x1, Cout=1): VPU multiply + lane reduce (avoid an N=1 MXU matmul).
    s = jnp.sum(h * w2_ref[...], axis=-1, keepdims=True)     # (TB*L, 1) f32
    s3 = s.reshape(tb, L, 1)                                  # layout no-op

    # Softmax over L, independently per batch element (stats in f32).
    m = jnp.max(s3, axis=1, keepdims=True)                    # (TB, 1, 1)
    e = jnp.exp(s3 - m)                                       # (TB, L, 1)
    denom = jnp.sum(e, axis=1, keepdims=True)                 # (TB, 1, 1)
    a = e * pl.reciprocal(denom, approx=False)                # (TB, L, 1)

    # Weighted pool over L. (For tiny L a VPU mul + sublane reduce is fine;
    # for very large L this could be routed through the MXU as a^T @ x.)
    pooled = jnp.sum(x3 * a, axis=1)                          # (TB, C) f32
    o_ref[...] = pooled.astype(o_ref.dtype)


def _pick_batch_tile(B, L, C, itemsize):
    # Target ~512 rows (TB*L) per grid step to amortize per-step pipeline
    # overhead, capped so the (double-buffered) x block stays small vs VMEM
    # (conservative budget also safe on v7x's 64 MiB VMEM).
    rows_target = 512
    vmem_budget = 8 << 20
    tb = max(1, rows_target // max(L, 1))
    tb = min(tb, max(1, vmem_budget // max(1, L * C * itemsize)))
    if tb >= B:
        return B                     # one grid step covers the whole batch
    return max(8, (tb // 8) * 8)     # multiple of 8 -> clean sublane tiling of (TB, C) output


def attention_forward(x_ncl, w1, b1, w2):
    """x_ncl: (B, C, L) in PyTorch Conv1d NCL convention.

    w1: (C, C, 1) conv1 weight (out, in, k); b1: (C,) conv1 bias;
    w2: (1, C, 1) conv2 weight (out, in, k), no bias.
    Returns (B, C): sum over L of x * softmax_L(conv2(tanh(conv1(x)))).
    """
    B, C, L = x_ncl.shape
    if L % 8 != 0:
        raise NotImplementedError(
            "attention_forward requires L % 8 == 0 for the sublane-aligned "
            "batch/length merge inside the kernel.")

    x_nlc = jnp.transpose(x_ncl, (0, 2, 1))          # (B, L, C)
    w1_io = jnp.transpose(w1[:, :, 0], (1, 0))       # (C_in, C_out)
    b1_row = b1.reshape(1, C)                        # (1, C)
    w2_row = w2[:, :, 0]                             # (1, C)

    TB = _pick_batch_tile(B, L, C, x_ncl.dtype.itemsize)
    num_tiles = -(-B // TB)                          # cdiv
    B_pad = num_tiles * TB
    if B_pad != B:
        pad = jnp.zeros((B_pad - B, L, C), dtype=x_nlc.dtype)
        x_nlc = jnp.concatenate([x_nlc, pad], axis=0)

    out = pl.pallas_call(
        _attention_kernel,
        out_shape=jax.ShapeDtypeStruct((B_pad, C), x_ncl.dtype),
        grid_spec=pltpu.PrefetchScalarGridSpec(
            num_scalar_prefetch=0,
            grid=(num_tiles,),
            in_specs=[
                pl.BlockSpec((TB, L, C), lambda t: (t, 0, 0)),  # x tile
                pl.BlockSpec((C, C), lambda t: (0, 0)),         # w1 (resident)
                pl.BlockSpec((1, C), lambda t: (0, 0)),         # b1 (resident)
                pl.BlockSpec((1, C), lambda t: (0, 0)),         # w2 row (resident)
            ],
            out_specs=pl.BlockSpec((TB, C), lambda t: (t, 0)),
        ),
        compiler_params=pltpu.CompilerParams(
            dimension_semantics=("parallel",),
        ),
    )(x_nlc, w1_io, b1_row, w2_row)
    return out[:B]


def attention_reference(x_ncl, w1, b1, w2):
    """Pure-JAX reference mirroring the PyTorch forward pass."""
    at = jnp.einsum("oc,bcl->bol", w1[:, :, 0], x_ncl) + b1[None, :, None]
    at = jnp.tanh(at)
    at = jnp.einsum("oc,bcl->bol", w2[:, :, 0], at)   # (B, 1, L)
    at = jax.nn.softmax(at, axis=2)
    return jnp.sum(x_ncl * at, axis=2)                # (B, C)


if __name__ == "__main__":
    key = jax.random.PRNGKey(0)
    B, C, L = 2, 4, 16

    k_x, k_w1, k_b1, k_w2 = jax.random.split(key, 4)
    x = jax.random.normal(k_x, (B, C, L), dtype=jnp.float32)
    # Deterministic synthetic parameters (shapes follow nn.Conv1d in __init__).
    w1 = jax.random.normal(k_w1, (C, C, 1), dtype=jnp.float32) * 0.5
    b1 = jax.random.normal(k_b1, (C,), dtype=jnp.float32) * 0.1
    w2 = jax.random.normal(k_w2, (1, C, 1), dtype=jnp.float32) * 0.5

    out = jax.block_until_ready(attention_forward(x, w1, b1, w2))

    ref = attention_reference(x, w1, b1, w2)
    assert out.shape == (B, C)
    assert jnp.allclose(out, ref, atol=1e-5, rtol=1e-5), (out, ref)

    print("KERNEL_OK")
</pallas_src>

<mosaic_0001>
module attributes {stable_mosaic.version = 11 : i64} {
  func.func @_attention_kernel(%arg0: i32, %arg1: memref<2x16x4xf32, #tpu.memory_space<vmem>>, %arg2: memref<4x4xf32, #tpu.memory_space<vmem>>, %arg3: memref<1x4xf32, #tpu.memory_space<vmem>>, %arg4: memref<1x4xf32, #tpu.memory_space<vmem>>, %arg5: memref<2x4xf32, #tpu.memory_space<vmem>>) attributes {dimension_semantics = [#tpu.dimension_semantics<parallel>], iteration_bounds = array<i64: 1>, scalar_prefetch = 0 : i64, scratch_operands = 0 : i64, tpu.core_type = #tpu.core_type<tc>, window_params = [{transform_indices = @transform_0, window_bounds = array<i64: 2, 16, 4>}, {pipeline_mode = #tpu.pipeline_mode<synchronous>, transform_indices = @transform_1, window_bounds = array<i64: 4, 4>}, {pipeline_mode = #tpu.pipeline_mode<synchronous>, transform_indices = @transform_2, window_bounds = array<i64: 1, 4>}, {pipeline_mode = #tpu.pipeline_mode<synchronous>, transform_indices = @transform_3, window_bounds = array<i64: 1, 4>}, {transform_indices = @transform_4, window_bounds = array<i64: 2, 4>}]} {
    %c0 = arith.constant 0 : index
    %c0_0 = arith.constant 0 : index
    %c0_1 = arith.constant 0 : index
    %0 = vector.load %arg1[%c0, %c0_0, %c0_1] : memref<2x16x4xf32, #tpu.memory_space<vmem>>, vector<2x16x4xf32>
    %1 = vector.shape_cast %0 : vector<2x16x4xf32> to vector<32x4xf32>
    %c0_2 = arith.constant 0 : index
    %c0_3 = arith.constant 0 : index
    %2 = vector.load %arg2[%c0_2, %c0_3] : memref<4x4xf32, #tpu.memory_space<vmem>>, vector<4x4xf32>
    %cst = arith.constant dense<0.000000e+00> : vector<32x4xf32>
    %3 = tpu.matmul %1, %2, %cst {dimension_numbers = #tpu.dot_dimension_numbers<[1], [0], [0], [1], [0, 0, 1, 1], [], []>} : vector<32x4xf32>, vector<4x4xf32>, vector<32x4xf32> -> vector<32x4xf32>
    %c0_4 = arith.constant 0 : index
    %c0_5 = arith.constant 0 : index
    %4 = vector.load %arg3[%c0_4, %c0_5] : memref<1x4xf32, #tpu.memory_space<vmem>>, vector<1x4xf32>
    %5 = vector.broadcast %4 : vector<1x4xf32> to vector<32x4xf32>
    %6 = arith.addf %3, %5 : vector<32x4xf32>
    %7 = math.tanh %6 : vector<32x4xf32>
    %c0_6 = arith.constant 0 : index
    %c0_7 = arith.constant 0 : index
    %8 = vector.load %arg4[%c0_6, %c0_7] : memref<1x4xf32, #tpu.memory_space<vmem>>, vector<1x4xf32>
    %9 = vector.broadcast %8 : vector<1x4xf32> to vector<32x4xf32>
    %10 = arith.mulf %7, %9 : vector<32x4xf32>
    %cst_8 = arith.constant dense<0.000000e+00> : vector<32xf32>
    %11 = vector.multi_reduction <add>, %10, %cst_8 [1] : vector<32x4xf32> to vector<32xf32>
    %12 = vector.shape_cast %11 : vector<32xf32> to vector<32x1xf32>
    %13 = vector.shape_cast %12 : vector<32x1xf32> to vector<2x16x1xf32>
    %cst_9 = arith.constant dense<0xFF800000> : vector<2x1xf32>
    %14 = vector.multi_reduction <maximumf>, %13, %cst_9 [1] : vector<2x16x1xf32> to vector<2x1xf32>
    %15 = vector.shape_cast %14 : vector<2x1xf32> to vector<2x1x1xf32>
    %16 = vector.broadcast %15 : vector<2x1x1xf32> to vector<2x16x1xf32>
    %17 = arith.subf %13, %16 : vector<2x16x1xf32>
    %18 = math.exp %17 : vector<2x16x1xf32>
    %cst_10 = arith.constant dense<0.000000e+00> : vector<2x1xf32>
    %19 = vector.multi_reduction <add>, %18, %cst_10 [1] : vector<2x16x1xf32> to vector<2x1xf32>
    %20 = vector.shape_cast %19 : vector<2x1xf32> to vector<2x1x1xf32>
    %21 = tpu.reciprocal %20 : vector<2x1x1xf32> -> vector<2x1x1xf32>
    %22 = vector.broadcast %21 : vector<2x1x1xf32> to vector<2x16x1xf32>
    %23 = arith.mulf %18, %22 : vector<2x16x1xf32>
    %24 = vector.broadcast %23 : vector<2x16x1xf32> to vector<2x16x4xf32>
    %25 = arith.mulf %0, %24 : vector<2x16x4xf32>
    %cst_11 = arith.constant dense<0.000000e+00> : vector<2x4xf32>
    %26 = vector.multi_reduction <add>, %25, %cst_11 [1] : vector<2x16x4xf32> to vector<2x4xf32>
    %c0_12 = arith.constant 0 : index
    %c0_13 = arith.constant 0 : index
    %27 = vector.load %arg5[%c0_12, %c0_13] : memref<2x4xf32, #tpu.memory_space<vmem>>, vector<2x4xf32>
    tpu.vector_store %arg5[%c0_12, %c0_13], %26 {strides = array<i32>} : memref<2x4xf32, #tpu.memory_space<vmem>>, vector<2x4xf32>,
    return
  }
  func.func @transform_0(%arg0: i32) -> (i32, i32, i32) {
    %c0_i32 = arith.constant 0 : i32
    %c0_i32_0 = arith.constant 0 : i32
    %c0_i32_1 = arith.constant 0 : i32
    return %arg0, %c0_i32, %c0_i32_0 : i32, i32, i32
  }
  func.func @transform_1(%arg0: i32) -> (i32, i32) {
    %c0_i32 = arith.constant 0 : i32
    %c0_i32_0 = arith.constant 0 : i32
    %c0_i32_1 = arith.constant 0 : i32
    return %c0_i32, %c0_i32_0 : i32, i32
  }
  func.func @transform_2(%arg0: i32) -> (i32, i32) {
    %c0_i32 = arith.constant 0 : i32
    %c0_i32_0 = arith.constant 0 : i32
    %c0_i32_1 = arith.constant 0 : i32
    return %c0_i32, %c0_i32_0 : i32, i32
  }
  func.func @transform_3(%arg0: i32) -> (i32, i32) {
    %c0_i32 = arith.constant 0 : i32
    %c0_i32_0 = arith.constant 0 : i32
    %c0_i32_1 = arith.constant 0 : i32
    return %c0_i32, %c0_i32_0 : i32, i32
  }
  func.func @transform_4(%arg0: i32) -> (i32, i32) {
    %c0_i32 = arith.constant 0 : i32
    %c0_i32_0 = arith.constant 0 : i32
    return %arg0, %c0_i32 : i32, i32
  }
}

</mosaic_0001>

<bundles_post_ra>
// kernel: tpu_custom_call.1
= control target key start
LH: loop header
LB: loop body
LE: loop exit
PB: predicated region body
PF: predicated region fallthrough
CT: control target
= control target key end

     0   :  { %vm40_vm0 = vcmask 1043456   ;;  %vm27_vm1 = vcmask 31744   ;;  %s349_s0 = inlined_call_operand.vmem [shape: f32[2,16,4], index: 0, kind: input, shape index: {}]   ;;  %s350_s1 = inlined_call_operand.vmem [shape: f32[4,4], index: 1, kind: input, shape index: {}]   ;;  %s351_s2 = inlined_call_operand.vmem [shape: f32[1,4], index: 2, kind: input, shape index: {}]   ;;  %s352_s3 = inlined_call_operand.vmem [shape: f32[1,4], index: 3, kind: input, shape index: {}]   ;;  %s353_s4 = inlined_call_operand.hbm [shape: f32[2,4], index: 4, kind: output, shape index: {}]  }
   0x1   :  { %v22_v0 = vld [vmem:[%s350_s1] sm:$0xf]  ;;  %v308_v2 = vld [vmem:[%s349_s0 + $0x10] sm:$0xff]  ;;  %v313_v3 = vld [vmem:[%s349_s0 + $0x8] sm:$0xff] }
   0x2   :  { %v303_v1 = vld [vmem:[%s349_s0] sm:$0xff]  ;;  %214 = vmatpush.msk.msra.mxu0 %vm40_vm0, %v22_v0  ;;  %220 = vmatpush.msk.msra.mxu2 %vm40_vm0, %v22_v0  ;;  %v318_v4 = vld [vmem:[%s349_s0 + $0x18] sm:$0xff] }
   0x3   :  { %215 = vmatmul.msk.f32.vlgmr.msra.gmra.mxu0 %vm27_vm1, %v303_v1  ;;  %217 = vmatmul.msk.f32.vlgmr.msra.gmra.mxu2 %vm27_vm1, %v308_v2 }
   0x4   :  { %9 = vsyncpa [#allocation3], 0  ;;  %219 = vmatpush.msk.msra.mxu1 %vm40_vm0, %v22_v0  ;;  %221 = vmatpush.msk.msra.mxu3 %vm40_vm0, %v22_v0  ;;  %v223_v5 = vld [vmem:[%s351_s2] ss:$0 sm:$0xff]  ;;  %s271_s2 = smov [#allocation2]   ;;  %s205_s29 = sshll.u32 %s353_s4, 4  ;;  %s206_s29 = int_to_ptr.hbm [resolvable:$true] %s205_s29 }
   0x5   :  { %216 = vmatmul.msk.f32.vlgmr.msra.gmra.mxu1 %vm27_vm1, %v313_v3  ;;  %218 = vmatmul.msk.f32.vlgmr.msra.gmra.mxu3 %vm27_vm1, %v318_v4  ;;  %v224_v11 = vld [vmem:[%s352_s3] ss:$0 sm:$0xff]  ;;  %s203_s3 = sshll.u32 %s271_s2, 4  ;;  %vm193_vm10 = vcmask 1041409   ;;  %vm196_vm11 = vcmask 25600   ;;  %s204_s3 = int_to_ptr.vmem [resolvable:$true] %s203_s3 }
  0x80   :  { %v61_v6 = vpop.f32.mrf.mxu0 }
  0x81   :  { %v62_v7 = vadd.f32 %v223_v5, %v61_v6 }
  0x82   :  { %v64_v8 = vpop.f32.mrf.mxu1 }
  0x83   :  { %225 = vtanh.f32 %v62_v7  ;;  %v65_v9 = vadd.f32 %v223_v5, %v64_v8 }
  0x85   :  { %227 = vtanh.f32 %v65_v9 }
  0x86   :  { %v67_v10 = vpop.f32.mrf.mxu2 }
  0x87   :  { %v68_v12 = vadd.f32 %v223_v5, %v67_v10 }
  0x88   :  { %v70_v13 = vpop.f32.mrf.mxu3 }
  0x89   :  { %v226_v14 = vpop.eup %225  ;;  %229 = vtanh.f32 %v68_v12  ;;  %v71_v15 = vadd.f32 %v223_v5, %v70_v13 }
  0x8a   :  { %v81_v16 = vmul.f32 %v226_v14, %v224_v11 }
  0x8b   :  { %v228_v17 = vpop.eup %227  ;;  %231 = vtanh.f32 %v71_v15 }
  0x8c   :  { %v85_v18 = vsel %vm27_vm1, %v81_v16, 0.0  ;;  %v82_v19 = vmul.f32 %v228_v17, %v224_v11 }
  0x8d   :  { %86 = vadd.xlane.f32.xlu0 %v85_v18 }
  0x8e   :  { %v88_v24 = vsel %vm27_vm1, %v82_v19, 0.0 }
  0x8f   :  { %v230_v20 = vpop.eup %229 }
  0x90   :  { %v83_v21 = vmul.f32 %v230_v20, %v224_v11 }
  0x91   :  { %v232_v22 = vpop.eup %231 }
  0x92   :  { %v91_v23 = vsel %vm27_vm1, %v83_v21, 0.0  ;;  %v84_v25 = vmul.f32 %v232_v22, %v224_v11 }
  0x93   :  { %92 = vadd.xlane.f32.xlu1 %v91_v23 }
  0x94   :  { %v94_v26 = vsel %vm27_vm1, %v84_v25, 0.0 }
  0x95   :  { %89 = vadd.xlane.f32.xlu0 %v88_v24 }
  0x9b   :  { %95 = vadd.xlane.f32.xlu1 %v94_v26 }
 0x100   :  { %v87_v27 = vpop.xlane.xlu0 %86 }
 0x106   :  { %v93_v28 = vpop.xlane.xlu1 %92 }
 0x108   :  { %v90_v29 = vpop.xlane.xlu0 %89 }
 0x109   :  { %v97_v30 = vmax.f32 %v87_v27, %v90_v29 }
 0x10b   :  { %v98_v31 = vrot.slane %v97_v30, 4 }
 0x10d   :  { %v99_v32 = vmax.f32 %v97_v30, %v98_v31 }
 0x10e   :  { %v96_v33 = vpop.xlane.xlu1 %95 }
 0x10f   :  { %v100_v34 = vrot.slane %v99_v32, 2  ;;  %v104_v35 = vmax.f32 %v93_v28, %v96_v33 }
 0x111   :  { %v101_v36 = vmax.f32 %v99_v32, %v100_v34  ;;  %v105_v37 = vrot.slane %v104_v35, 4 }
 0x113   :  { %v102_v38 = vrot.slane %v101_v36, 1  ;;  %v106_v39 = vmax.f32 %v104_v35, %v105_v37 }
 0x115   :  { %v103_v40 = vmax.f32 %v101_v36, %v102_v38  ;;  %v107_v41 = vrot.slane %v106_v39, 2 }
 0x117   :  { %v111_v42 = vsub.f32 %v87_v27, %v103_v40  ;;  %v112_v43 = vsub.f32 %v90_v29, %v103_v40  ;;  %v108_v44 = vmax.f32 %v106_v39, %v107_v41 }
 0x119   :  { %v115_v45 = vmul.f32 1.442695, %v111_v42  ;;  %v117_v46 = vmul.f32 1.442695, %v112_v43  ;;  %v109_v47 = vrot.slane %v108_v44, 1 }
 0x11b   :  { %233 = vpow2.f32 %v115_v45  ;;  %v110_v48 = vmax.f32 %v108_v44, %v109_v47 }
 0x11c   :  { %235 = vpow2.f32 %v117_v46 }
 0x11d   :  { %v113_v49 = vsub.f32 %v93_v28, %v110_v48  ;;  %v114_v50 = vsub.f32 %v96_v33, %v110_v48 }
 0x11f   :  { %v119_v51 = vmul.f32 1.442695, %v113_v49  ;;  %v121_v52 = vmul.f32 1.442695, %v114_v50 }
 0x121   :  { %v234_v53 = vpop.eup %233  ;;  %237 = vpow2.f32 %v119_v51 }
 0x122   :  { %v236_v54 = vpop.eup %235  ;;  %239 = vpow2.f32 %v121_v52 }
 0x123   :  { %v123_v55 = vadd.f32 %v236_v54, %v234_v53 }
 0x125   :  { %v124_v56 = vrot.slane %v123_v55, 4 }
 0x127   :  { %v238_v57 = vpop.eup %237  ;;  %v125_v58 = vadd.f32 %v124_v56, %v123_v55 }
 0x128   :  { %v240_v59 = vpop.eup %239 }
 0x129   :  { %v126_v60 = vrot.slane %v125_v58, 2  ;;  %v130_v61 = vadd.f32 %v240_v59, %v238_v57 }
 0x12b   :  { %v127_v62 = vadd.f32 %v126_v60, %v125_v58  ;;  %v131_v63 = vrot.slane %v130_v61, 4 }
 0x12d   :  { %v128_v0 = vrot.slane %v127_v62, 1  ;;  %v132_v5 = vadd.f32 %v131_v63, %v130_v61 }
 0x12f   :  { %v129_v6 = vadd.f32 %v128_v0, %v127_v62  ;;  %v133_v7 = vrot.slane %v132_v5, 2 }
 0x131   :  { %241 = vrcp.f32 %v129_v6  ;;  %v134_v8 = vadd.f32 %v133_v7, %v132_v5  ;;  %v148_v14 = vand.u32 2147483648, %v129_v6  ;;  %v146_v16 = vand.u32 2147483647, %v129_v6 }
 0x132   :  { %vm142_vm3 = vweird.f32 %v129_v6 }
 0x133   :  { %v135_v9 = vrot.slane %v134_v8, 1  ;;  %v149_v19 = vor.u32 1.1754944e-38, %v148_v14  ;;  %vm147_vm5 = vcmp.eq.f32.partialorder %v146_v16, 8.507059e+37 }
 0x135   :  { %v136_v10 = vadd.f32 %v135_v9, %v134_v8 }
 0x137   :  { %v242_v11 = vpop.eup %241  ;;  %243 = vrcp.f32 %v136_v10  ;;  %v162_v26 = vand.u32 2147483648, %v136_v10  ;;  %v160_v28 = vand.u32 2147483647, %v136_v10  ;;  %vm156_vm7 = vweird.f32 %v136_v10 }
 0x138   :  { %v138_v12 = vmul.f32 %v242_v11, %v129_v6  ;;  %vm143_vm2 = vweird.f32 %v242_v11 }
 0x139   :  { %vm144_vm4 = vmor %vm142_vm3, %vm143_vm2  ;;  %v163_v34 = vor.u32 1.1754944e-38, %v162_v26  ;;  %vm161_vm9 = vcmp.eq.f32.partialorder %v160_v28, 8.507059e+37 }
 0x13a   :  { %v139_v13 = vsub.f32 1.0, %v138_v12 }
 0x13c   :  { %v140_v15 = vmul.f32 %v242_v11, %v139_v13 }
 0x13d   :  { %v244_v17 = vpop.eup %243 }
 0x13e   :  { %v141_v18 = vadd.f32 %v242_v11, %v140_v15  ;;  %v152_v20 = vmul.f32 %v244_v17, %v136_v10  ;;  %vm157_vm6 = vweird.f32 %v244_v17 }
 0x13f   :  { %vm158_vm8 = vmor %vm156_vm7, %vm157_vm6 }
 0x140   :  { %v145_v21 = vsel %vm144_vm4, %v242_v11, %v141_v18  ;;  %v153_v23 = vsub.f32 1.0, %v152_v20 }
 0x141   :  { %v150_v22 = vsel %vm147_vm5, %v149_v19, %v145_v21 }
 0x142   :  { %v165_v24 = vmul.f32 %v234_v53, %v150_v22  ;;  %v166_v25 = vmul.f32 %v236_v54, %v150_v22  ;;  %v154_v27 = vmul.f32 %v244_v17, %v153_v23 }
 0x144   :  { %v169_v29 = vmul.f32 %v165_v24, %v303_v1  ;;  %v170_v30 = vmul.f32 %v166_v25, %v313_v3  ;;  %v155_v31 = vadd.f32 %v244_v17, %v154_v27 }
 0x146   :  { %v173_v32 = vsel %vm27_vm1, %v169_v29, 0.0  ;;  %v174_v33 = vsel %vm27_vm1, %v170_v30, 0.0  ;;  %v159_v36 = vsel %vm158_vm8, %v244_v17, %v155_v31 }
 0x147   :  { %v175_v35 = vadd.f32 %v174_v33, %v173_v32  ;;  %v164_v37 = vsel %vm161_vm9, %v163_v34, %v159_v36 }
 0x148   :  { %v167_v38 = vmul.f32 %v238_v57, %v164_v37  ;;  %v168_v39 = vmul.f32 %v240_v59, %v164_v37 }
 0x149   :  { %v176_v40 = vrot.slane %v175_v35, 4 }
 0x14a   :  { %v171_v41 = vmul.f32 %v167_v38, %v308_v2  ;;  %v172_v1 = vmul.f32 %v168_v39, %v318_v4 }
 0x14b   :  { %v177_v3 = vadd.f32 %v176_v40, %v175_v35 }
 0x14c   :  { %v182_v42 = vsel %vm27_vm1, %v171_v41, 0.0  ;;  %v183_v43 = vsel %vm27_vm1, %v172_v1, 0.0 }
 0x14d   :  { %v184_v44 = vadd.f32 %v183_v43, %v182_v42  ;;  %v178_v45 = vrot.slane %v177_v3, 2 }
 0x14f   :  { %v185_v46 = vrot.slane %v184_v44, 4  ;;  %v179_v47 = vadd.f32 %v178_v45, %v177_v3 }
 0x151   :  { %v186_v48 = vadd.f32 %v185_v46, %v184_v44  ;;  %v180_v50 = vrot.slane %v179_v47, 1 }
 0x153   :  { %v187_v49 = vrot.slane %v186_v48, 2  ;;  %v181_v2 = vadd.f32 %v180_v50, %v179_v47 }
 0x155   :  { %v188_v51 = vadd.f32 %v187_v49, %v186_v48 }
 0x157   :  { %v189_v52 = vrot.slane %v188_v51, 1 }
 0x159   :  { %v190_v4 = vadd.f32 %v189_v52, %v188_v51 }
 0x15b   :  { %v194_v53 = vsel %vm193_vm10, %v190_v4, %v181_v2 }
 0x15c   :  { %197 = vst.msk [vmem:[#allocation2] sm:$0x3] %vm196_vm11, %v194_v53 }
 0x15d   :  { %208 = dma.vmem_to_hbm [thread:$0]  %s204_s3, 32, %s206_s29, [#allocation3]  }
 0x15e   :  { %269 = dma.done.wait [#allocation3], 32  }
 0x15f   :  { %270 = vsyncadd [#allocation3], 4294967264 }
 0x160   :  { %213 = vsyncpa [#allocation3], 1 }

</bundles_post_ra>
